<compile_context>
chip_gen: v7x
topology: tpu7x:2x2x1
jax: 0.10.0
libtpu: 0.0.40
codegen_flags: <defaults>
</compile_context>

<pallas_src>
import functools

import jax
import jax.numpy as jnp
from jax.experimental import pallas as pl
from jax.experimental.pallas import tpu as pltpu


# ----------------------------------------------------------------------------
# Kernel: y = x * [cos|cos] + rotate_half(x) * [-sin|sin]
# ----------------------------------------------------------------------------
def _rope_kernel(x_ref, cos_ref, sin_ref, out_ref, *, half, use_roll):
    x = x_ref[...].astype(jnp.float32)          # (R, Tt, D)
    cos = cos_ref[...]                          # (Tt, D) = [cos | cos]
    sin = sin_ref[...]                          # (Tt, D) = [-sin | sin] (sign folded)

    if use_roll:
        # lane-aligned head dim: free XLU rotate ([x_imag | x_real])
        x_rot = pltpu.roll(x, shift=half, axis=-1)
    else:
        # small D: static-slice rotate (compile-time slices, no dynamic gather)
        x_rot = jnp.concatenate([x[..., half:], x[..., :half]], axis=-1)

    out_ref[...] = (x * cos + x_rot * sin).astype(out_ref.dtype)


# ----------------------------------------------------------------------------
# Tiling helpers (trace-time Python)
# ----------------------------------------------------------------------------
def _largest_divisor_leq(n, cap):
    cap = int(max(1, min(n, cap)))
    for d in range(cap, 0, -1):
        if n % d == 0:
            return d
    return 1


def _pick_seq_tile(t, cap=512):
    """Largest divisor of t that is a multiple of 8 and <= cap; else full t."""
    if t <= cap:
        return t
    start = cap - (cap % 8)
    for d in range(start, 7, -8):
        if t % d == 0:
            return d
    return t


# ----------------------------------------------------------------------------
# Wrapper
# ----------------------------------------------------------------------------
def rotary_positional_encoding(x, *, max_length, offset=0):
    """Apply RoPE to x of shape (..., T, D). Returns an array of the same shape/dtype."""
    orig_shape = x.shape
    D = orig_shape[-1]
    T = orig_shape[-2]
    assert D % 2 == 0, "dim must be even"
    assert offset + T <= max_length, "sequence (with offset) exceeds max_length"
    half = D // 2

    # Flatten leading dims (free metadata reshape; RoPE is independent of them).
    N = 1
    for s in orig_shape[:-2]:
        N *= int(s)
    x3 = x.reshape(N, T, D)

    # Trace-time tables: only the rows actually used ([offset, offset+T)),
    # full width and sign-folded so the kernel math is lane-dense.
    pos = jnp.arange(offset, offset + T, dtype=jnp.float32)
    theta = 1.0 / (10000.0 ** (jnp.arange(0, D, 2, dtype=jnp.float32) / D))
    pt = pos[:, None] * theta[None, :]                      # (T, D/2)
    cos_h, sin_h = jnp.cos(pt), jnp.sin(pt)
    cos_full = jnp.concatenate([cos_h, cos_h], axis=-1)     # (T, D)
    sin_signed = jnp.concatenate([-sin_h, sin_h], axis=-1)  # (T, D)

    # Tile choices: ~2 MiB blocks, seq tile a multiple of 8 (or full T),
    # and at least 2 row-blocks when possible so both v7x TensorCores get work.
    tile_t = _pick_seq_tile(T)
    itemsize = jnp.dtype(x.dtype).itemsize
    budget_rows = max(1, (2 * 1024 * 1024) // max(1, tile_t * D * itemsize))
    if N >= 2:
        budget_rows = min(budget_rows, max(1, N // 2))
    rows_block = _largest_divisor_leq(N, budget_rows)
    grid = (N // rows_block, T // tile_t)

    kernel = functools.partial(_rope_kernel, half=half, use_roll=(D % 128 == 0))

    out = pl.pallas_call(
        kernel,
        out_shape=jax.ShapeDtypeStruct((N, T, D), x.dtype),
        grid=grid,
        in_specs=[
            pl.BlockSpec((rows_block, tile_t, D), lambda i, j: (i, j, 0)),  # x slab
            pl.BlockSpec((tile_t, D), lambda i, j: (j, 0)),                 # cos (resident over rows)
            pl.BlockSpec((tile_t, D), lambda i, j: (j, 0)),                 # sin (resident over rows)
        ],
        out_specs=pl.BlockSpec((rows_block, tile_t, D), lambda i, j: (i, j, 0)),
        compiler_params=pltpu.CompilerParams(
            dimension_semantics=("parallel", "parallel"),
            # Kept well under the v7x 64 MiB physical VMEM; ample on v5e/v6e.
            vmem_limit_bytes=48 * 1024 * 1024),
    )(x3, cos_full, sin_signed)

    return out.reshape(orig_shape)


# ----------------------------------------------------------------------------
# Pure-JAX reference (mirrors the PyTorch forward) for correctness checks
# ----------------------------------------------------------------------------
def reference_rope(x, *, max_length, offset=0):
    D = x.shape[-1]
    T = x.shape[-2]
    pos = jnp.arange(max_length, dtype=jnp.float32)
    theta = 1.0 / (10000.0 ** (jnp.arange(0, D, 2, dtype=jnp.float32) / D))
    pt = pos[:, None] * theta[None, :]
    cos_t = jnp.cos(pt)[offset:offset + T]
    sin_t = jnp.sin(pt)[offset:offset + T]
    xr, xi = x[..., :D // 2], x[..., D // 2:]
    yr = xr * cos_t - xi * sin_t
    yi = xr * sin_t + xi * cos_t
    return jnp.concatenate([yr, yi], axis=-1)


if __name__ == "__main__":
    B, H, T, dim, max_length = 2, 4, 8, 32, 16
    k1, k2 = jax.random.split(jax.random.PRNGKey(0))

    # 4-D input (batch, heads, seq, dim) — the typical attention usage of the module.
    x = jax.random.normal(k1, (B, H, T, dim), dtype=jnp.float32)
    y = rotary_positional_encoding(x, max_length=max_length)
    jax.block_until_ready(y)
    y_ref = reference_rope(x, max_length=max_length)
    assert y.shape == x.shape and y.dtype == x.dtype
    assert jnp.allclose(y, y_ref, rtol=1e-5, atol=1e-5), "RoPE mismatch (4-D, offset=0)"

    # 3-D input (batch, seq, dim) with a nonzero static offset (module's `offset` kwarg).
    x2 = jax.random.normal(k2, (2, T, dim), dtype=jnp.float32)
    y2 = rotary_positional_encoding(x2, max_length=max_length, offset=5)
    jax.block_until_ready(y2)
    y2_ref = reference_rope(x2, max_length=max_length, offset=5)
    assert jnp.allclose(y2, y2_ref, rtol=1e-5, atol=1e-5), "RoPE mismatch (3-D, offset=5)"

    print("KERNEL_OK")
</pallas_src>

<mosaic_0001>
module attributes {stable_mosaic.version = 11 : i64} {
  func.func @_rope_kernel(%arg0: i32, %arg1: i32, %arg2: memref<4x8x32xf32, #tpu.memory_space<vmem>>, %arg3: memref<8x32xf32, #tpu.memory_space<vmem>>, %arg4: memref<8x32xf32, #tpu.memory_space<vmem>>, %arg5: memref<4x8x32xf32, #tpu.memory_space<vmem>>) attributes {dimension_semantics = [#tpu.dimension_semantics<parallel>, #tpu.dimension_semantics<parallel>], iteration_bounds = array<i64: 2, 1>, scalar_prefetch = 0 : i64, scratch_operands = 0 : i64, tpu.core_type = #tpu.core_type<tc>, window_params = [{transform_indices = @transform_0, window_bounds = array<i64: 4, 8, 32>}, {transform_indices = @transform_1, window_bounds = array<i64: 8, 32>}, {transform_indices = @transform_2, window_bounds = array<i64: 8, 32>}, {transform_indices = @transform_3, window_bounds = array<i64: 4, 8, 32>}]} {
    %c0 = arith.constant 0 : index
    %c0_0 = arith.constant 0 : index
    %c0_1 = arith.constant 0 : index
    %0 = vector.load %arg2[%c0, %c0_0, %c0_1] : memref<4x8x32xf32, #tpu.memory_space<vmem>>, vector<4x8x32xf32>
    %c0_2 = arith.constant 0 : index
    %c0_3 = arith.constant 0 : index
    %1 = vector.load %arg3[%c0_2, %c0_3] : memref<8x32xf32, #tpu.memory_space<vmem>>, vector<8x32xf32>
    %c0_4 = arith.constant 0 : index
    %c0_5 = arith.constant 0 : index
    %2 = vector.load %arg4[%c0_4, %c0_5] : memref<8x32xf32, #tpu.memory_space<vmem>>, vector<8x32xf32>
    %3 = vector.extract_strided_slice %0 {offsets = [0, 0, 16], sizes = [4, 8, 16], strides = [1, 1, 1]} : vector<4x8x32xf32> to vector<4x8x16xf32>
    %4 = vector.extract_strided_slice %0 {offsets = [0, 0, 0], sizes = [4, 8, 16], strides = [1, 1, 1]} : vector<4x8x32xf32> to vector<4x8x16xf32>
    %5 = tpu.concatenate %3, %4 in 2 : vector<4x8x16xf32>, vector<4x8x16xf32> -> vector<4x8x32xf32>
    %6 = vector.shape_cast %1 : vector<8x32xf32> to vector<1x8x32xf32>
    %7 = vector.broadcast %6 : vector<1x8x32xf32> to vector<4x8x32xf32>
    %8 = arith.mulf %0, %7 : vector<4x8x32xf32>
    %9 = vector.shape_cast %2 : vector<8x32xf32> to vector<1x8x32xf32>
    %10 = vector.broadcast %9 : vector<1x8x32xf32> to vector<4x8x32xf32>
    %11 = arith.mulf %5, %10 : vector<4x8x32xf32>
    %12 = arith.addf %8, %11 : vector<4x8x32xf32>
    %c0_6 = arith.constant 0 : index
    %c0_7 = arith.constant 0 : index
    %c0_8 = arith.constant 0 : index
    %13 = vector.load %arg5[%c0_6, %c0_7, %c0_8] : memref<4x8x32xf32, #tpu.memory_space<vmem>>, vector<4x8x32xf32>
    tpu.vector_store %arg5[%c0_6, %c0_7, %c0_8], %12 {strides = array<i32>} : memref<4x8x32xf32, #tpu.memory_space<vmem>>, vector<4x8x32xf32>,
    return
  }
  func.func @transform_0(%arg0: i32, %arg1: i32) -> (i32, i32, i32) {
    %c0_i32 = arith.constant 0 : i32
    %c0_i32_0 = arith.constant 0 : i32
    return %arg0, %arg1, %c0_i32 : i32, i32, i32
  }
  func.func @transform_1(%arg0: i32, %arg1: i32) -> (i32, i32) {
    %c0_i32 = arith.constant 0 : i32
    %c0_i32_0 = arith.constant 0 : i32
    return %arg1, %c0_i32 : i32, i32
  }
  func.func @transform_2(%arg0: i32, %arg1: i32) -> (i32, i32) {
    %c0_i32 = arith.constant 0 : i32
    %c0_i32_0 = arith.constant 0 : i32
    return %arg1, %c0_i32 : i32, i32
  }
  func.func @transform_3(%arg0: i32, %arg1: i32) -> (i32, i32, i32) {
    %c0_i32 = arith.constant 0 : i32
    %c0_i32_0 = arith.constant 0 : i32
    return %arg0, %arg1, %c0_i32 : i32, i32, i32
  }
}

</mosaic_0001>

<bundles_post_ra>
// kernel: tpu_custom_call.1
= control target key start
LH: loop header
LB: loop body
LE: loop exit
PB: predicated region body
PF: predicated region fallthrough
CT: control target
= control target key end

     0   :  { %8 = vsyncpa [#allocation3], 0  ;;  %s1000_s0 = inlined_call_operand.hbm [shape: f32[8,8,32], index: 0, kind: input, shape index: {}]   ;;  %s1001_s1 = inlined_call_operand.hbm [shape: f32[8,32], index: 1, kind: input, shape index: {}]   ;;  %s1002_s2 = inlined_call_operand.hbm [shape: f32[8,32], index: 2, kind: input, shape index: {}]   ;;  %s1003_s3 = inlined_call_operand.hbm [shape: f32[8,8,32], index: 3, kind: output, shape index: {}]  }
   0x1   :  { %10 = vsyncpa [#allocation3 + $0x1], 0 }
   0x2   :  { %11 = vsyncpa [#allocation6], 0 }
   0x3   :  { %12 = vsyncpa [#allocation4], 0 }
   0x4   :  { %14 = vsyncpa [#allocation4 + $0x1], 0  ;;  %s740_s12 = smov 0   ;;  %s742_s13 = smov 0  }
   0x5   :  { %s744_s14 = smov 0   ;;  %s746_s15 = smov 0  }
   0x6   :  { %s748_s16 = smov 0   ;;  %s750_s17 = smov 0  }
   0x7 LB: > { %s426_s18 = sadd.s32 4294967295, %s708_s17   ;;  %s427_s19 = sadd.s32 4294967294, %s708_s17   ;;  %s708_s17 = sphi %s750_s17, %s20_s17   ;;  %s704_s16 = sphi %s748_s16, %s1029_s16   ;;  %s700_s15 = sphi %s746_s15, %s1028_s15   ;;  %s696_s14 = sphi %s744_s14, %s1027_s14   ;;  %s692_s13 = sphi %s742_s13, %s1026_s13   ;;  %s688_s12 = sphi %s740_s12, %s1025_s12  }
   0x8   : > { %s41_s20 = sadd.s32 1, %s696_s14  ;;  %p48_p0 = scmp.ne.s32.totalorder %s696_s14, %s692_s13 }
   0x9   : > { %p49_p1 = scmp.eq.s32.totalorder %s708_s17, 0  ;;  %p54_p2 = scmp.ne.s32.totalorder %s692_s13, %s688_s12 }
   0xa   : > { %p778_p3 = scmp.eq.s32.totalorder %s426_s18, 0  ;;  %p132_p4 = scmp.eq.s32.totalorder %s426_s18, 1 }
   0xb   : > { %p782_p5 = por %p49_p1, %p48_p0  ;;  %p138_p6 = scmp.eq.s32.totalorder %s427_s19, 1 }
   0xc   : > { %s1010_s21 = scalar_select %p778_p3, 1, 0 }
   0xd   : > { %p788_p7 = por %p778_p3, %p54_p2  ;;  %p792_p8 = por %p132_p4, %p48_p0 }
   0xe   : > { %p796_p9 = por %p138_p6, %p54_p2  ;;  %p428_p10 = scmp.ge.s32.totalorder %s708_s17, 1 }
   0xf   : > { %s1012_s23 = scalar_select %p788_p7, 1, 0 }
  0x10   : > { %s1013_s24 = scalar_select %p792_p8, 1, 0 }
  0x11   : > { %s1014_s25 = scalar_select %p796_p9, 1, 0 }
  0x12   : > { %p145_p11 = scmp.lt.s32.totalorder %s708_s17, 3  ;;  %s710_s27 = smov [#allocation5]  }
  0x13   : > { %s160_s28 = sshll.u32 %s710_s27, 4  ;;  %p476_p1 = scmp.lt.s32.totalorder %s708_s17, 2  ;;  %s161_s28 = int_to_ptr.vmem [resolvable:$true] %s160_s28 }
  0x14   : > { %p803_p13 = pnand %p428_p10, %p145_p11  ;;  %s711_s30 = smov [#allocation7]  }
  0x15   : > { %p812_p4 = pnand %p476_p1, %p782_p5  ;;  %s173_s4 = sshll.u32 %s711_s30, 4  ;;  %s822_s4 = int_to_ptr.vmem [resolvable:$true] %s173_s4 }
  0x16   : > { %s1015_s26 = scalar_select %p803_p13, 1, 0 }
  0x17   : > { %p459_p0 = pneg %p803_p13  ;;  %s536_s8 = scalar_lea.hbm %s1001_s1, 128 }
  0x18   : > { %s1016_s29 = scalar_select %p812_p4, 1, 0 }
  0x19   : > { %p818_p2 = pnand %p459_p0, %p778_p3  ;;  %p537_p5 = scmp.ne.s32.totalorder %s1001_s1, %s536_s8 }
  0x1a   : > { %p543_p1 = scmp.lt.u32.totalorder %s536_s8, %s1001_s1 }
  0x1b   : > { %p538_p6 = pneg %p818_p2 }
  0x1d   : > { %p539_p10 = pnand %p538_p6, %p537_p5 }
  0x1f   : > { %p540_p11 = pneg %p539_p10 }
  0x21   : > { %p545_p0 = pnand %p543_p1, %p540_p11 }
  0x23   : > { %548 = shalt.err (!%p545_p0)
}
  0x24   : > { %s549_s19 = scalar_lea.vmem %s161_s28, 128  ;;  %p557_p3 = scmp.lt.s32.totalorder %s161_s28, %s161_s28 }
  0x25   : > { %p550_p12 = scmp.ne.s32.totalorder %s161_s28, %s549_s19  ;;  %p558_p7 = scmp.lt.s32.totalorder %s549_s19, %s549_s19 }
  0x27   : > { %p552_p9 = pnand %p550_p12, %p538_p6  ;;  %p559_p13 = por %p558_p7, %p557_p3 }
  0x29   : > { %p553_p8 = pneg %p552_p9 }
  0x2b   : > { %p560_p4 = pnand %p559_p13, %p553_p8 }
  0x2d   : > { %563 = shalt.err (!%p560_p4)
}
  0x2e   : > { %462 = dma.hbm_to_vmem [thread:$0]  (!%p818_p2), %s1001_s1, 128, %s161_s28, [#allocation6]  }
  0x2f   : > { %s564_s7 = scalar_lea.hbm %s1002_s2, 128 }
  0x30   : > { %p565_p9 = scmp.ne.s32.totalorder %s1002_s2, %s564_s7  ;;  %p571_p8 = scmp.lt.u32.totalorder %s564_s7, %s1002_s2 }
  0x32   : > { %p567_p3 = pnand %p565_p9, %p538_p6 }
  0x34   : > { %p568_p7 = pneg %p567_p3 }
  0x36   : > { %p573_p12 = pnand %p571_p8, %p568_p7 }
  0x38   : > { %576 = shalt.err (!%p573_p12)
}
  0x39   : > { %s577_s28 = scalar_lea.vmem %s822_s4, 128  ;;  %p585_p10 = scmp.lt.s32.totalorder %s822_s4, %s822_s4 }
  0x3a   : > { %p578_p13 = scmp.ne.s32.totalorder %s822_s4, %s577_s28  ;;  %p586_p11 = scmp.lt.s32.totalorder %s577_s28, %s577_s28 }
  0x3c   : > { %p580_p4 = pnand %p578_p13, %p538_p6  ;;  %p587_p1 = por %p586_p11, %p585_p10 }
  0x3e   : > { %p581_p5 = pneg %p580_p4 }
  0x40   : > { %p588_p0 = pnand %p587_p1, %p581_p5 }
  0x42   : > { %591 = shalt.err (!%p588_p0)
}
  0x43   : > { %465 = dma.hbm_to_vmem [thread:$0]  (!%p818_p2), %s1002_s2, 128, %s822_s4, [#allocation6]  }
  0x44   : > { %s32_s22 = sadd.s32 1, %s704_s16  ;;  %s184_s27 = sand.u32 1, %s696_s14  }
  0x45   : > { %p34_p6 = scmp.ge.s32.totalorder %s32_s22, 2  ;;  %s432_s30 = sshll.u32 %s184_s27, 5 }
  0x46   : > { %s445_s6 = sshll.u32 %s704_s16, 9  ;;  %s188_s4 = scalar_lea.vmem [#allocation2], %s432_s30 }
  0x47   : > { %s1031_s22 = smov (%p34_p6, %s32_s22), 0  ;;  %s879_s8 = scalar_lea.hbm %s1000_s0, %s445_s6 }
  0x48   : > { %s36_s9 = ssub.s32 %s704_s16, %s1031_s22  ;;  %s196_s10 = sshll.u32 %s188_s4, 4  ;;  %s883_s10 = int_to_ptr.vmem [resolvable:$true] %s196_s10 }
  0x49   : > { %p39_p2 = scmp.eq.s32.totalorder %s36_s9, 0  ;;  %s890_s28 = scalar_lea.sflag [#allocation3], %s184_s27 }
  0x4a   : > { %s592_s18 = scalar_lea.hbm %s879_s8, 512  ;;  %p1018_p3 = scmp.ne.s32.totalorder %s1016_s29, 0 }
  0x4b   : > { %s888_s11 = scalar_select %p39_p2, %s696_s14, %s41_s20  }
  0x4c   : > { %p593_p9 = scmp.ne.s32.totalorder %s879_s8, %s592_s18  ;;  %p594_p7 = pneg %p1018_p3 }
  0x4d   : > { %s597_s30 = scalar_lea.hbm %s1000_s0, 1024  ;;  %p598_p13 = scmp.lt.u32.totalorder %s879_s8, %s1000_s0 }
  0x4e   : > { %p595_p8 = pnand %p594_p7, %p593_p9  ;;  %p599_p4 = scmp.lt.u32.totalorder %s597_s30, %s592_s18 }
  0x4f   : > { %p601_p10 = scmp.lt.u32.totalorder %s592_s18, %s879_s8 }
  0x50   : > { %p596_p12 = pneg %p595_p8  ;;  %p600_p5 = por %p599_p4, %p598_p13 }
  0x52   : > { %p602_p11 = por %p601_p10, %p600_p5 }
  0x54   : > { %p603_p1 = pnand %p602_p11, %p596_p12 }
  0x56   : > { %606 = shalt.err (!%p603_p1)
}
  0x57   : > { %s607_s20 = scalar_lea.vmem %s883_s10, 512  ;;  %s712_s27 = smov [#allocation2]  }
  0x58   : > { %p608_p0 = scmp.ne.s32.totalorder %s883_s10, %s607_s20  ;;  %s612_s9 = sshll.u32 %s712_s27, 4  ;;  %s613_s9 = int_to_ptr.vmem [resolvable:$false] %s612_s9 }
  0x59   : > { %s614_s4 = scalar_lea.vmem %s613_s9, 1024  ;;  %p615_p9 = scmp.lt.s32.totalorder %s883_s10, %s613_s9 }
  0x5a   : > { %p610_p6 = pnand %p608_p0, %p594_p7  ;;  %p616_p8 = scmp.lt.s32.totalorder %s614_s4, %s607_s20 }
  0x5c   : > { %p611_p2 = pneg %p610_p6  ;;  %p617_p13 = por %p616_p8, %p615_p9 }
  0x5e   : > { %p618_p4 = pnand %p617_p13, %p611_p2 }
  0x60   : > { %621 = shalt.err (!%p618_p4)
}
  0x61   : > { %s713_s18 = smov 128   ;;  %s714_s19 = smov 8  }
  0x62   : > { %469 = dma.hbm_to_vmem [thread:$0]  (!%p1018_p3), %s879_s8, 512, %s883_s10, %s890_s28, %s713_s18, %s713_s18, %s714_s19  }
  0x63   : > { %p1019_p7 = scmp.ne.s32.totalorder %s1015_s26, 0 }
  0x64   : > { %s921_s6 = sand.u32 (!%p1019_p7), 1, %s692_s13   ;;  %p1020_p12 = scmp.ne.s32.totalorder (!%p1019_p7), %s1012_s23, 0 }
  0x65   : > { %208 = sbr.rel (%p1019_p7) target bundleno = 260 (0x104), region = 32  ;;  %s436_s30 = sshll.u32 (!%p1019_p7), %s921_s6, 5 }
  0x66   : > { %s211_s5 = scalar_lea.sflag (!%p1019_p7), [#allocation3], %s921_s6  ;;  %s214_s7 = scalar_lea.vmem (!%p1019_p7), [#allocation2], %s436_s30 }
  0x6c   : > { %675 = dma.done.wait (%p1020_p12), %s211_s5, 512  }
  0x6d   : > { %677 = vsyncadd (%p1020_p12), %s211_s5, 4294966784  ;;  %p1021_p3 = scmp.ne.s32.totalorder %s1010_s21, 0 }
  0x6f   : > { %679 = dma.done.wait (%p1021_p3), [#allocation6], 256  }
  0x70   : > { %681 = vsyncadd (%p1021_p3), [#allocation6], 4294967040  ;;  %v249_v0 = vld [vmem:[%s214_s7 + $0x10] sm:$0xff]  ;;  %v247_v1 = vld [vmem:[%s214_s7] sm:$0xff]  ;;  %s715_s26 = smov 112   ;;  %s716_s29 = smov 16  }
  0x71   : > { %261 = vrot.lane.b32.xlu1 %v249_v0, %s715_s26  ;;  %257 = vrot.lane.b32.xlu0 %v247_v1, %s715_s26  ;;  %v250_v2 = vld [vmem:[%s214_s7 + $0x18] sm:$0xff]  ;;  %v248_v3 = vld [vmem:[%s214_s7 + $0x8] sm:$0xff]  ;;  %v251_v8 = vld [vmem:[#allocation5] sm:$0xff]  ;;  %vm281_vm0 = vcmask 130048   ;;  %vm298_vm1 = vcmask 261120   ;;  %s446_s21 = sshll.u32 %s700_s15, 9 }
  0x72   : > { %v252_v9 = vld [vmem:[#allocation7] sm:$0xff]  ;;  %v286_v10 = vmul.f32 %v251_v8, %v247_v1  ;;  %v287_v11 = vmul.f32 %v251_v8, %v248_v3  ;;  %v288_v18 = vmul.f32 %v251_v8, %v249_v0  ;;  %v289_v19 = vmul.f32 %v251_v8, %v250_v2  ;;  %s244_s23 = scalar_lea.vmem [#allocation8], %s436_s30  ;;  %s947_s20 = scalar_lea.hbm %s1003_s3, %s446_s21 }
  0x73   : > { %s318_s8 = sshll.u32 %s244_s23, 4  ;;  %s304_s15 = scalar_lea.sflag [#allocation4], %s921_s6  ;;  %s949_s8 = int_to_ptr.vmem [resolvable:$true] %s318_s8 }
  0x74   : > { %s622_s27 = scalar_lea.vmem %s949_s8, 512  ;;  %p1022_p10 = scmp.ne.s32.totalorder %s1013_s24, 0 }
  0x75   : > { %263 = vrot.lane.b32.xlu1 %v250_v2, %s715_s26  ;;  %259 = vrot.lane.b32.xlu0 %v248_v3, %s715_s26  ;;  %p623_p5 = scmp.ne.s32.totalorder %s949_s8, %s622_s27  ;;  %s717_s9 = smov [#allocation8]  }
  0x76   : > { %s626_s4 = sshll.u32 %s717_s9, 4  ;;  %s627_s4 = int_to_ptr.vmem [resolvable:$false] %s626_s4 }
  0x77   : > { %p624_p11 = pnand %p623_p5, %p1022_p10  ;;  %s628_s18 = scalar_lea.vmem %s627_s4, 1024 }
  0x78   : > { %p629_p0 = scmp.lt.s32.totalorder %s949_s8, %s627_s4  ;;  %p630_p6 = scmp.lt.s32.totalorder %s628_s18, %s622_s27 }
  0x79   : > { %271 = vrot.lane.b32.xlu1 %v248_v3, %s716_s29  ;;  %269 = vrot.lane.b32.xlu0 %v247_v1, %s716_s29  ;;  %p625_p1 = pneg %p624_p11 }
  0x7a   : > { %p631_p2 = por %p630_p6, %p629_p0 }
  0x7c   : > { %p632_p9 = pnand %p631_p2, %p625_p1 }
  0x7d   : > { %275 = vrot.lane.b32.xlu1 %v250_v2, %s716_s29  ;;  %273 = vrot.lane.b32.xlu0 %v249_v0, %s716_s29 }
  0xe3   : > { %v262_v4 = vpop.permute.xlu1 %261  ;;  %v258_v5 = vpop.permute.xlu0 %257 }
  0xe7   : > { %v264_v6 = vpop.permute.xlu1 %263  ;;  %v260_v7 = vpop.permute.xlu0 %259 }
  0xeb   : > { %v272_v12 = vpop.permute.xlu1 %271  ;;  %v270_v13 = vpop.permute.xlu0 %269 }
  0xec   : > { %v283_v14 = vsel %vm281_vm0, %v260_v7, %v272_v12  ;;  %v282_v15 = vsel %vm281_vm0, %v258_v5, %v270_v13 }
  0xed   : > { %v291_v16 = vmul.f32 %v283_v14, %v252_v9  ;;  %v290_v17 = vmul.f32 %v282_v15, %v252_v9 }
  0xef   : > { %v295_v20 = vadd.f32 %v291_v16, %v287_v11  ;;  %v294_v21 = vadd.f32 %v290_v17, %v286_v10  ;;  %v276_v22 = vpop.permute.xlu1 %275  ;;  %v274_v23 = vpop.permute.xlu0 %273 }
  0xf0   : > { %v285_v24 = vsel %vm281_vm0, %v264_v6, %v276_v22  ;;  %v284_v25 = vsel %vm281_vm0, %v262_v4, %v274_v23 }
  0xf1   : > { %300 = vst.msk [vmem:[%s244_s23 + $0x8] sm:$0xff] %vm298_vm1, %v295_v20  ;;  %299 = vst.msk [vmem:[%s244_s23] sm:$0xff] %vm298_vm1, %v294_v21  ;;  %v293_v26 = vmul.f32 %v285_v24, %v252_v9  ;;  %v292_v27 = vmul.f32 %v284_v25, %v252_v9 }
  0xf3   : > { %v297_v28 = vadd.f32 %v293_v26, %v289_v19  ;;  %v296_v29 = vadd.f32 %v292_v27, %v288_v18 }
  0xf5   : > { %302 = vst.msk [vmem:[%s244_s23 + $0x18] sm:$0xff] %vm298_vm1, %v297_v28  ;;  %301 = vst.msk [vmem:[%s244_s23 + $0x10] sm:$0xff] %vm298_vm1, %v296_v29 }
  0xf6   : > { %635 = shalt.err (!%p632_p9)
}
  0xf7   : > { %s636_s19 = scalar_lea.hbm %s947_s20, 512  ;;  %s640_s7 = scalar_lea.hbm %s1003_s3, 1024 }
  0xf8   : > { %p637_p8 = scmp.ne.s32.totalorder %s947_s20, %s636_s19  ;;  %p641_p7 = scmp.lt.u32.totalorder %s947_s20, %s1003_s3 }
  0xf9   : > { %p642_p12 = scmp.lt.u32.totalorder %s640_s7, %s636_s19  ;;  %p644_p5 = scmp.lt.u32.totalorder %s636_s19, %s947_s20 }
  0xfa   : > { %p638_p13 = pnand %p637_p8, %p1022_p10 }
  0xfb   : > { %p643_p3 = por %p642_p12, %p641_p7 }
  0xfc   : > { %p639_p4 = pneg %p638_p13 }
  0xfd   : > { %p645_p11 = por %p644_p5, %p643_p3 }
  0xff   : > { %p646_p1 = pnand %p645_p11, %p639_p4 }
 0x101   : > { %649 = shalt.err (!%p646_p1)
}
 0x102   : > { %s718_s21 = smov 128   ;;  %s719_s23 = smov 8  }
 0x103   : > { %457 = dma.vmem_to_hbm [thread:$0]  (%p1022_p10), %s949_s8, 512, %s947_s20, %s304_s15, %s718_s21, %s718_s21, %s719_s23  }
 0x104 PF: > { %s333_s10 = sand.u32 1, %s688_s12   ;;  %p1023_p0 = scmp.ne.s32.totalorder %s1014_s25, 0 }
 0x105   : > { %p1024_p6 = scmp.ge.s32.totalorder %s708_s17, 2  ;;  %s334_s28 = scalar_lea.sflag [#allocation4], %s333_s10 }
 0x107   : > { %p471_p2 = pnand %p1024_p6, %p1023_p0 }
 0x109   : > { %683 = dma.done.wait (!%p471_p2), %s334_s28, 512  }
 0x10a   : > { %685 = vsyncadd (!%p471_p2), %s334_s28, 4294966784  ;;  %s20_s17 = sadd.s32 1, %s708_s17   ;;  %s1025_s12 = smov %s692_s13 }
 0x10b   : > { %p17_p9 = scmp.ge.s32.totalorder %s20_s17, 4   ;;  %s1026_s13 = smov %s696_s14 }
 0x10c   : > { %s1027_s14 = smov %s888_s11  ;;  %s1028_s15 = smov %s704_s16 }
 0x10d   : > { %s1029_s16 = smov %s1031_s22  ;;  %19 = sbr.rel (!%p17_p9) target bundleno = 7 (0x7), region = 87 }
 0x114   :  { %339 = vsyncpa [#allocation3], 1 }
 0x115   :  { %341 = vsyncpa [#allocation3 + $0x1], 1 }
 0x116   :  { %342 = vsyncpa [#allocation6], 1 }
 0x117   :  { %343 = vsyncpa [#allocation4], 1 }
 0x118   :  { %345 = vsyncpa [#allocation4 + $0x1], 1 }

</bundles_post_ra>
